<compile_context>
chip_gen: v5e
topology: v5e:2x2
jax: 0.10.0
libtpu: 0.0.40
codegen_flags: <defaults>
</compile_context>

<pallas_src>
from functools import partial
from math import sqrt

import jax
import jax.numpy as jnp
from jax.experimental import pallas as pl
from jax.experimental.pallas import tpu as pltpu


def _lora_kernel(w_ref, b_ref, a_ref, o_ref, *, alpha):
    # Fold alpha into the small (tO, R) operand: tO*R multiplies, not tO*tI.
    b = b_ref[...].astype(jnp.float32) * alpha
    z = jnp.dot(b, a_ref[...].astype(jnp.float32),
                preferred_element_type=jnp.float32)
    o_ref[...] = (w_ref[...].astype(jnp.float32) + z).astype(o_ref.dtype)


def _cdiv(a, b):
    return -(-a // b)


def _round_up(x, m):
    return _cdiv(x, m) * m


def _vmem_budget_bytes():
    """Conservative per-kernel VMEM budget, derived from physical VMEM size."""
    phys = 64 << 20  # assume the smallest (v7x per-TC) if the query fails
    try:
        phys = int(pltpu.get_tpu_info().vmem_capacity_bytes)
    except Exception:
        pass
    # Use at most half of physical VMEM, and never ask for more than 40 MiB.
    return min(phys // 2, 40 << 20)


def _choose_tiles(O, I, R, w_bytes, lora_bytes, budget):
    """Pick (tO, tI).  Prefer contiguous full-I row tiles; 2D only if needed."""
    align_o = max(8, 32 // w_bytes)            # 8 f32 / 16 bf16 / 32 int8,fp8
    resident = 2 * (O * R + R * I) * lora_bytes        # LoRA factors, generous
    tile_budget = max((budget - resident) // 4, 1 << 19)  # 4 buffers in flight

    row_bytes = max(I * w_bytes, 1)
    max_rows = tile_budget // row_bytes
    if max_rows >= min(O, align_o):
        # Full-I tiles fit: 1D grid over O, contiguous HBM DMAs per buffer.
        tO = min(O, 1024, max(align_o, (max_rows // align_o) * align_o))
        tI = I
    else:
        # Very wide rows: fall back to 2D lane-dense tiling.
        tI = min(I, max(128, (min(I, 2048) // 128) * 128))
        max_rows = tile_budget // max(tI * w_bytes, 1)
        tO = min(O, 1024, max(align_o, (max_rows // align_o) * align_o))

    # Give both v7x TensorCores work: at least two blocks along O if possible.
    if tO >= O and O >= 2 * align_o:
        tO = min(tO, _round_up(_cdiv(O, 2), align_o))
    tO = min(tO, O)

    # Balance block sizes across the grid (avoid a tiny ragged last block).
    if tO < O:
        nblk = _cdiv(O, tO)
        tO = min(tO, _round_up(_cdiv(O, nblk), align_o))

    return tO, tI


def lora_forward(weight, lora_b, lora_a, alpha):
    """weight: (O, I), lora_b: (O, R), lora_a: (R, I) -> weight + alpha*(B@A)."""
    O, I = weight.shape
    R = lora_a.shape[0]
    assert lora_b.shape == (O, R)
    assert lora_a.shape == (R, I)

    w_bytes = jnp.dtype(weight.dtype).itemsize
    lora_bytes = max(jnp.dtype(lora_a.dtype).itemsize,
                     jnp.dtype(lora_b.dtype).itemsize)
    budget = _vmem_budget_bytes()
    tO, tI = _choose_tiles(O, I, R, w_bytes, lora_bytes, budget)

    # TODO(synk): float(alpha) requires a static scalar; plumb alpha through a
    #             (1,1) SMEM ref / scalar prefetch if a traced alpha is needed.
    kernel = partial(_lora_kernel, alpha=float(alpha))

    if tI == I:
        grid = (pl.cdiv(O, tO),)
        in_specs = [
            pl.BlockSpec((tO, I), lambda i: (i, 0)),   # weight: contiguous rows
            pl.BlockSpec((tO, R), lambda i: (i, 0)),   # lora_b: varies with i
            pl.BlockSpec((R, I), lambda i: (0, 0)),    # lora_a: fully resident
        ]
        out_specs = pl.BlockSpec((tO, I), lambda i: (i, 0))
        dims = ("parallel",)
    else:
        grid = (pl.cdiv(O, tO), pl.cdiv(I, tI))
        in_specs = [
            pl.BlockSpec((tO, tI), lambda i, j: (i, j)),
            pl.BlockSpec((tO, R), lambda i, j: (i, 0)),
            pl.BlockSpec((R, tI), lambda i, j: (0, j)),
        ]
        out_specs = pl.BlockSpec((tO, tI), lambda i, j: (i, j))
        dims = ("parallel", "parallel")

    # Pipelined VMEM use: 2x weight tile + 2x out tile + small LoRA blocks;
    # pass an explicit limit so chip-default scoped VMEM never binds.
    pipeline_bytes = (4 * tO * tI * w_bytes
                      + 2 * (tO * R + R * tI) * lora_bytes)
    vmem_limit = int(min(max(pipeline_bytes + (8 << 20), 32 << 20),
                         budget + (16 << 20)))

    cost = pl.CostEstimate(
        flops=2 * O * I * R,
        transcendentals=0,
        bytes_accessed=2 * O * I * w_bytes + (O * R + R * I) * lora_bytes,
    )

    return pl.pallas_call(
        kernel,
        out_shape=jax.ShapeDtypeStruct((O, I), weight.dtype),
        grid_spec=pl.GridSpec(grid=grid, in_specs=in_specs, out_specs=out_specs),
        compiler_params=pltpu.CompilerParams(
            dimension_semantics=dims, vmem_limit_bytes=vmem_limit),
        cost_estimate=cost,
    )(weight, lora_b, lora_a)


def _reference(weight, lora_b, lora_a, alpha):
    return weight + alpha * (lora_b @ lora_a)


if __name__ == "__main__":
    key = jax.random.PRNGKey(0)

    # --- Small shapes consistent with LoRA wrapping a Linear(in=128, out=64) ---
    in_features, out_features, rank, alpha = 128, 64, 8, 2.0
    k_w, k_a, k_b = jax.random.split(key, 3)

    # Deterministic parameter init mirroring the module's __init__:
    #   lora_a = randn(rank, in) / sqrt(rank); lora_b = zeros(out, rank)
    # (use non-zero lora_b so the kernel computes a non-trivial update).
    weight = jax.random.normal(k_w, (out_features, in_features), dtype=jnp.float32)
    lora_a = jax.random.normal(k_a, (rank, in_features), dtype=jnp.float32) / sqrt(rank)
    lora_b = 0.01 * jax.random.normal(k_b, (out_features, rank), dtype=jnp.float32)

    out = lora_forward(weight, lora_b, lora_a, alpha)
    out = jax.block_until_ready(out)
    ref = _reference(weight, lora_b, lora_a, alpha)
    assert out.shape == (out_features, in_features)
    assert jnp.allclose(out, ref, atol=1e-5, rtol=1e-5)

    # --- Larger shape to exercise the multi-block (megacore-split) grid ---
    O2, I2, R2 = 512, 4096, 16
    k_w2, k_a2, k_b2 = jax.random.split(jax.random.PRNGKey(1), 3)
    weight2 = jax.random.normal(k_w2, (O2, I2), dtype=jnp.float32)
    lora_a2 = jax.random.normal(k_a2, (R2, I2), dtype=jnp.float32) / sqrt(R2)
    lora_b2 = 0.01 * jax.random.normal(k_b2, (O2, R2), dtype=jnp.float32)

    out2 = lora_forward(weight2, lora_b2, lora_a2, alpha)
    out2 = jax.block_until_ready(out2)
    ref2 = _reference(weight2, lora_b2, lora_a2, alpha)
    assert jnp.allclose(out2, ref2, atol=1e-4, rtol=1e-5)

    print("KERNEL_OK")
</pallas_src>

<mosaic_0001>
module attributes {stable_mosaic.version = 11 : i64} {
  func.func @_lora_kernel(%arg0: i32, %arg1: memref<32x128xf32, #tpu.memory_space<vmem>>, %arg2: memref<32x8xf32, #tpu.memory_space<vmem>>, %arg3: memref<8x128xf32, #tpu.memory_space<vmem>>, %arg4: memref<32x128xf32, #tpu.memory_space<vmem>>) attributes {dimension_semantics = [#tpu.dimension_semantics<parallel>], iteration_bounds = array<i64: 2>, scalar_prefetch = 0 : i64, scratch_operands = 0 : i64, tpu.core_type = #tpu.core_type<tc>, window_params = [{transform_indices = @transform_0, window_bounds = array<i64: 32, 128>}, {transform_indices = @transform_1, window_bounds = array<i64: 32, 8>}, {pipeline_mode = #tpu.pipeline_mode<synchronous>, transform_indices = @transform_2, window_bounds = array<i64: 8, 128>}, {transform_indices = @transform_3, window_bounds = array<i64: 32, 128>}]} {
    %c0 = arith.constant 0 : index
    %c0_0 = arith.constant 0 : index
    %0 = vector.load %arg2[%c0, %c0_0] : memref<32x8xf32, #tpu.memory_space<vmem>>, vector<32x8xf32>
    %cst = arith.constant 2.000000e+00 : f32
    %1 = vector.broadcast %cst : f32 to vector<32x8xf32>
    %2 = arith.mulf %0, %1 : vector<32x8xf32>
    %c0_1 = arith.constant 0 : index
    %c0_2 = arith.constant 0 : index
    %3 = vector.load %arg3[%c0_1, %c0_2] : memref<8x128xf32, #tpu.memory_space<vmem>>, vector<8x128xf32>
    %cst_3 = arith.constant dense<0.000000e+00> : vector<32x128xf32>
    %4 = tpu.matmul %2, %3, %cst_3 {dimension_numbers = #tpu.dot_dimension_numbers<[1], [0], [0], [1], [0, 0, 1, 1], [], []>} : vector<32x8xf32>, vector<8x128xf32>, vector<32x128xf32> -> vector<32x128xf32>
    %c0_4 = arith.constant 0 : index
    %c0_5 = arith.constant 0 : index
    %5 = vector.load %arg1[%c0_4, %c0_5] : memref<32x128xf32, #tpu.memory_space<vmem>>, vector<32x128xf32>
    %6 = arith.addf %5, %4 : vector<32x128xf32>
    %c0_6 = arith.constant 0 : index
    %c0_7 = arith.constant 0 : index
    %7 = vector.load %arg4[%c0_6, %c0_7] : memref<32x128xf32, #tpu.memory_space<vmem>>, vector<32x128xf32>
    tpu.vector_store %arg4[%c0_6, %c0_7], %6 {strides = array<i32>} : memref<32x128xf32, #tpu.memory_space<vmem>>, vector<32x128xf32>,
    return
  }
  func.func @transform_0(%arg0: i32) -> (i32, i32) {
    %c0_i32 = arith.constant 0 : i32
    %c0_i32_0 = arith.constant 0 : i32
    return %arg0, %c0_i32 : i32, i32
  }
  func.func @transform_1(%arg0: i32) -> (i32, i32) {
    %c0_i32 = arith.constant 0 : i32
    %c0_i32_0 = arith.constant 0 : i32
    return %arg0, %c0_i32 : i32, i32
  }
  func.func @transform_2(%arg0: i32) -> (i32, i32) {
    %c0_i32 = arith.constant 0 : i32
    %c0_i32_0 = arith.constant 0 : i32
    %c0_i32_1 = arith.constant 0 : i32
    return %c0_i32, %c0_i32_0 : i32, i32
  }
  func.func @transform_3(%arg0: i32) -> (i32, i32) {
    %c0_i32 = arith.constant 0 : i32
    %c0_i32_0 = arith.constant 0 : i32
    return %arg0, %c0_i32 : i32, i32
  }
}

</mosaic_0001>

<bundles_post_ra>
// kernel: tpu_custom_call.1
= control target key start
LH: loop header
LB: loop body
LE: loop exit
PB: predicated region body
PF: predicated region fallthrough
CT: control target
= control target key end

     0   :  { %8 = vsyncpa [#allocation3], 0  ;;  %s586_s0 = inlined_call_operand.vmem [shape: f32[64,128], index: 0, kind: input, shape index: {}]   ;;  %s587_s1 = inlined_call_operand.vmem [shape: f32[64,8], index: 1, kind: input, shape index: {}]   ;;  %s588_s2 = inlined_call_operand.vmem [shape: f32[8,128], index: 2, kind: input, shape index: {}]   ;;  %s589_s3 = inlined_call_operand.hbm [shape: f32[64,128], index: 3, kind: output, shape index: {}]  }
   0x1   :  { %10 = vsyncpa [#allocation3 + $0x1], 0  ;;  %s496_s12 = smov 0   ;;  %s498_s13 = smov 0  }
   0x2   :  { %s500_s14 = smov 0   ;;  %s502_s15 = smov 0  }
   0x3 LB: > { %s517_s16 = sadd.s32 4294967295, %s472_s15   ;;  %s347_s17 = sadd.s32 4294967294, %s472_s15   ;;  %s472_s15 = sphi %s502_s15, %s595_s15   ;;  %s468_s14 = sphi %s500_s14, %s594_s14   ;;  %s464_s13 = sphi %s498_s13, %s593_s13   ;;  %s460_s12 = sphi %s496_s12, %s592_s12  }
   0x4   : > { %s521_s18 = sadd.s32 1, %s472_s15   ;;  %s96_s19 = sadd.s32 1, %s468_s14 }
   0x5   : > { %s93_s20 = ssub.s32 %s472_s15, %s521_s18  ;;  %p106_p0 = scmp.ne.s32.totalorder %s468_s14, %s464_s13 }
   0x6   : > { %p94_p1 = scmp.eq.s32.totalorder %s93_s20, 0  ;;  %p107_p2 = scmp.eq.s32.totalorder %s517_s16, 1 }
   0x7   : > { %p112_p3 = scmp.ne.s32.totalorder %s464_s13, %s460_s12  ;;  %p113_p4 = scmp.eq.s32.totalorder %s347_s17, 1 }
   0x8   : > { %s532_s21 = scalar_select %p94_p1, %s468_s14, %s96_s19  }
   0x9   : > { %p534_p5 = por %p107_p2, %p106_p0  ;;  %p538_p6 = por %p113_p4, %p112_p3 }
   0xa   : > { %p350_p7 = scmp.ge.s32.totalorder %s472_s15, 1  ;;  %p152_p8 = scmp.lt.s32.totalorder %s472_s15, 3 }
   0xc   : > { %p153_p9 = pnand %p350_p7, %p152_p8 }
   0xd   : > { %s352_s26 = sshll.u32 (!%p153_p9), %s517_s16, 2  ;;  %s178_s4 = sand.u32 (!%p153_p9), 1, %s464_s13  }
   0xe   : > { %156 = sbr.rel (%p153_p9) target bundleno = 164 (0xa4), region = 32  ;;  %p182_p10 = scmp.lt.s32.totalorder (!%p153_p9), %s352_s26, 7 }
   0xf   : > { %s351_s8 = sshll.u32 (!%p153_p9), %s178_s4, 5  ;;  %s365_s9 = sshll.u32 (!%p153_p9), %s517_s16, 5 }
  0x10   : > { %s269_s17 = scalar_lea.hbm (!%p153_p9), %s589_s3, %s365_s9  ;;  %s180_s19 = scalar_lea.vmem (!%p153_p9), [#allocation2], %s351_s8 }
  0x11   : > { %s270_s20 = sshll.u32 (!%p153_p9), %s180_s19, 4  ;;  %s272_s24 = sshll.u32 (!%p153_p9), %s269_s17, 4  ;;  %s271_s20 = int_to_ptr.vmem [resolvable:$true] %s270_s20  ;;  %s273_s24 = int_to_ptr.hbm [resolvable:$true] %s272_s24 }
  0x12   : > { %s258_s16 = scalar_lea.sflag (!%p153_p9), [#allocation3], %s178_s4  ;;  %s424_s25 = sshra.s32 (!%p153_p9), %s273_s24, 4  ;;  %s425_s25 = int_to_ptr.hbm [resolvable:$true] %s424_s25 }
  0x13   : > { %v202_v0 = vld [vmem:[%s588_s2] sm:$0xff]  ;;  %s597_s26 = smov (!%p182_p10, %s352_s26), 7  ;;  %vm203_vm0 = vcmask 64512   ;;  %s430_s29 = scalar_lea.hbm %s589_s3, 64 }
  0x14   : > { %367 = vmatpush.msra.mxu2 %v202_v0  ;;  %368 = vmatpush.msra.mxu3 %v202_v0  ;;  %s353_s27 = sshll.u32 %s597_s26, 3  ;;  %s426_s26 = scalar_lea.hbm %s425_s25, 32 }
  0x15   : > { %231 = vmatpush.msra.mxu0 %v202_v0  ;;  %366 = vmatpush.msra.mxu1 %v202_v0  ;;  %s191_s30 = scalar_lea.vmem %s587_s1, %s353_s27  ;;  %s185_s7 = scalar_lea.vmem %s586_s0, %s353_s27 }
  0x16   : > { %v196_v1 = vld [vmem:[%s191_s30 + $0x10] sm:$0xff]  ;;  %v197_v2 = vld [vmem:[%s191_s30 + $0x18] sm:$0xff]  ;;  %v194_v3 = vld [vmem:[%s191_s30] sm:$0xff]  ;;  %p427_p11 = scmp.ne.s32.totalorder %s425_s25, %s426_s26  ;;  %p431_p0 = scmp.lt.s32.totalorder %s425_s25, %s589_s3 }
  0x17   : > { %v200_v4 = vmul.f32 2.0, %v196_v1  ;;  %v201_v5 = vmul.f32 2.0, %v197_v2  ;;  %v198_v6 = vmul.f32 2.0, %v194_v3  ;;  %v195_v7 = vld [vmem:[%s191_s30 + $0x8] sm:$0xff]  ;;  %v245_v9 = vld [vmem:[%s185_s7] sm:$0xff]  ;;  %v247_v15 = vld [vmem:[%s185_s7 + $0x10] sm:$0xff]  ;;  %p432_p1 = scmp.lt.s32.totalorder %s430_s29, %s426_s26 }
  0x18   : > { %v199_v8 = vmul.f32 2.0, %v195_v7  ;;  %v246_v10 = vld [vmem:[%s185_s7 + $0x8] sm:$0xff]  ;;  %v248_v16 = vld [vmem:[%s185_s7 + $0x18] sm:$0xff]  ;;  %p428_p12 = pnand %p427_p11, %p534_p5 }
  0x19   : > { %358 = vmatmul.msk.f32.vlgmr.msra.gmra.mxu2 %vm203_vm0, %v200_v4  ;;  %359 = vmatmul.msk.f32.vlgmr.msra.gmra.mxu3 %vm203_vm0, %v201_v5  ;;  %p433_p2 = por %p432_p1, %p431_p0 }
  0x1a   : > { %356 = vmatmul.msk.f32.vlgmr.msra.gmra.mxu0 %vm203_vm0, %v198_v6  ;;  %357 = vmatmul.msk.f32.vlgmr.msra.gmra.mxu1 %vm203_vm0, %v199_v8  ;;  %p429_p13 = pneg %p428_p12 }
  0x1c   : > { %p434_p3 = pnand %p433_p2, %p429_p13 }
  0x97   : > { %v233_v11 = vpop.f32.mrf.mxu0  ;;  %v236_v12 = vpop.f32.mrf.mxu1 }
  0x98   : > { %v249_v13 = vadd.f32 %v245_v9, %v233_v11  ;;  %v250_v14 = vadd.f32 %v246_v10, %v236_v12 }
  0x9a   : > { %253 = vst [vmem:[%s180_s19] sm:$0xff] %v249_v13 }
  0x9b   : > { %254 = vst [vmem:[%s180_s19 + $0x8] sm:$0xff] %v250_v14 }
  0x9c   : > { %v239_v17 = vpop.f32.mrf.mxu2  ;;  %v242_v18 = vpop.f32.mrf.mxu3 }
  0x9d   : > { %v251_v19 = vadd.f32 %v247_v15, %v239_v17  ;;  %v252_v20 = vadd.f32 %v248_v16, %v242_v18 }
  0x9f   : > { %255 = vst [vmem:[%s180_s19 + $0x10] sm:$0xff] %v251_v19 }
  0xa0   : > { %256 = vst [vmem:[%s180_s19 + $0x18] sm:$0xff] %v252_v20 }
  0xa1   : > { %437 = shalt.err (!%p434_p3)
}
  0xa2   : > { %s474_s4 = smov 128   ;;  %s475_s6 = smov 8  }
  0xa3   : > { %369 = dma.vmem_to_hbm [thread:$0]  (%p534_p5), %s271_s20, 512, %s273_s24, %s258_s16, %s474_s4, %s474_s4, %s475_s6  }
  0xa4 PF: > { %p375_p4 = scmp.ge.s32.totalorder %s472_s15, 2  ;;  %s287_s7 = sand.u32 1, %s460_s12  }
  0xa5   : > { %s288_s8 = scalar_lea.sflag [#allocation3], %s287_s7 }
  0xa6   : > { %p372_p7 = pnand %p375_p4, %p538_p6 }
  0xa8   : > { %p373_p8 = pneg %p372_p7 }
  0xaa   : > { %455 = dma.done.wait (%p373_p8), %s288_s8, 512  }
  0xab   : > { %457 = vsyncadd (%p373_p8), %s288_s8, 4294966784  ;;  %p13_p9 = scmp.ge.s32.totalorder %s521_s18, 4   ;;  %s592_s12 = smov %s464_s13 }
  0xac   : > { %s593_s13 = smov %s468_s14  ;;  %s594_s14 = smov %s532_s21 }
  0xad   : > { %s595_s15 = smov %s521_s18  ;;  %15 = sbr.rel (!%p13_p9) target bundleno = 3 (0x3), region = 70 }
  0xb2   :  { %294 = vsyncpa [#allocation3], 1 }
  0xb3   :  { %296 = vsyncpa [#allocation3 + $0x1], 1 }

</bundles_post_ra>
